<compile_context>
chip_gen: v5e
topology: v5e:2x2
jax: 0.10.0
libtpu: 0.0.40
codegen_flags: <defaults>
</compile_context>

<pallas_src>
import jax
import jax.numpy as jnp
from jax.experimental import pallas as pl
from jax.experimental.pallas import tpu as pltpu

LANE = 128             # padded hidden width (one full vreg lane span)
HIDDEN = 64            # true hidden width of the PyTorch module
OUT_COUNT = 2          # true output width of the PyTorch module
OUT_PAD = 8            # fc3 weights padded to 8 output columns; result sliced to 2
MAX_BATCH_TILE = 4096  # batch rows per grid step (perf review: 4096-8192)


def _round_up(v, m):
    return ((v + m - 1) // m) * m


def localnet_kernel(x_ref, w1_ref, b1_ref, w2_ref, b2_ref, w3_ref, b3_ref, q_ref):
    """Fused 3-layer MLP on one batch tile.

    x_ref:  [TB, K]    f32 (true input width, no HBM padding)
    w1_ref: [K, 128]   f32, b1_ref: [1, 128] f32
    w2_ref: [128, 128] bf16, b2_ref: [1, 128] f32
    w3_ref: [128, 8]   f32, b3_ref: [1, 8]   f32
    q_ref:  [TB, 2]    f32 (narrow output block -> tiny HBM writeback)
    Hidden lanes 64..127 are exact zeros end-to-end (zero-padded weights/biases + ReLU).
    """
    x = x_ref[...]  # f32

    # fc1 + relu (f32 operands, f32 accumulation)
    y1 = jnp.dot(x, w1_ref[...], preferred_element_type=jnp.float32) + b1_ref[...]
    y1 = jnp.maximum(y1, 0.0).astype(jnp.bfloat16)   # bf16 operand for the big MXU push

    # fc2 + relu (bf16 MXU operands, f32 accumulation / bias / relu)
    y2 = jnp.dot(y1, w2_ref[...], preferred_element_type=jnp.float32) + b2_ref[...]
    y2 = jnp.maximum(y2, 0.0)                        # stays f32 for the f32 fc3

    # fc3 (no activation, f32) -- narrow result, store only the 2 real Q columns
    q = jnp.dot(y2, w3_ref[...], preferred_element_type=jnp.float32) + b3_ref[...]
    q_ref[...] = q[:, :OUT_COUNT]


@jax.jit
def localnet_forward(x, padded_params):
    """x: [B, input_count] float32. padded_params: dict from prepare_padded_params()."""
    w1, b1, w2, b2, w3, b3 = (
        padded_params["w1"], padded_params["b1"],
        padded_params["w2"], padded_params["b2"],
        padded_params["w3"], padded_params["b3"],
    )
    B, K = x.shape

    # Batch-tile selection:
    #  * small batches: one full-size block (no boundary handling needed),
    #  * large batches: >= 2 tiles (uses both TCs on v7x), rounded to 16 rows (bf16
    #    sublane packing), capped by MAX_BATCH_TILE for VMEM.
    if B <= 16:
        TB = B
    else:
        TB = min(MAX_BATCH_TILE, _round_up(-(-B // 2), 16))
    n_tiles = pl.cdiv(B, TB)

    const2 = lambda i: (0, 0)  # weights/biases: same block every step -> stay VMEM-resident

    flops = 2 * B * (K * LANE + LANE * LANE + LANE * OUT_PAD)
    bytes_accessed = (
        x.size * x.dtype.itemsize
        + B * OUT_COUNT * 4
        + sum(a.size * a.dtype.itemsize for a in (w1, b1, w2, b2, w3, b3))
    )

    q = pl.pallas_call(
        localnet_kernel,
        out_shape=jax.ShapeDtypeStruct((B, OUT_COUNT), jnp.float32),
        grid=(n_tiles,),
        in_specs=[
            pl.BlockSpec((TB, K), lambda i: (i, 0)),      # x: streams over batch tiles
            pl.BlockSpec(w1.shape, const2),               # w1  [K, 128]   f32
            pl.BlockSpec(b1.shape, const2),               # b1  [1, 128]   f32
            pl.BlockSpec(w2.shape, const2),               # w2  [128, 128] bf16
            pl.BlockSpec(b2.shape, const2),               # b2  [1, 128]   f32
            pl.BlockSpec(w3.shape, const2),               # w3  [128, 8]   f32
            pl.BlockSpec(b3.shape, const2),               # b3  [1, 8]     f32
        ],
        out_specs=pl.BlockSpec((TB, OUT_COUNT), lambda i: (i, 0)),
        compiler_params=pltpu.CompilerParams(
            dimension_semantics=("parallel",),
            vmem_limit_bytes=40 * 1024 * 1024,   # big tiles clear v5e's 16 MiB default,
        ),                                        # stay under v7x's 64 MiB physical VMEM
        cost_estimate=pl.CostEstimate(
            flops=flops, transcendentals=0, bytes_accessed=bytes_accessed),
    )(x, w1, b1, w2, b2, w3, b3)
    return q


def init_params(key, input_count, hidden=HIDDEN, out_count=OUT_COUNT):
    """Deterministic init mimicking nn.Linear's uniform(-1/sqrt(fan_in), 1/sqrt(fan_in)).
    Weights stored as [in, out] (already transposed for x @ W). Unpadded f32."""
    ks = jax.random.split(key, 6)

    def lin(kw, kb, fan_in, fan_out):
        bound = 1.0 / jnp.sqrt(jnp.float32(fan_in))
        w = jax.random.uniform(kw, (fan_in, fan_out), jnp.float32, -bound, bound)
        b = jax.random.uniform(kb, (1, fan_out), jnp.float32, -bound, bound)
        return w, b

    w1, b1 = lin(ks[0], ks[1], input_count, hidden)
    w2, b2 = lin(ks[2], ks[3], hidden, hidden)
    w3, b3 = lin(ks[4], ks[5], hidden, out_count)
    return {"w1": w1, "b1": b1, "w2": w2, "b2": b2, "w3": w3, "b3": b3}


def prepare_padded_params(params):
    """Zero-pad the hidden dims to 128 and the output dim to 8; keep the true input width.
    w1/w3 stay f32 (fidelity), w2 is bf16 (MXU operand), biases f32."""
    K = params["w1"].shape[0]
    w1 = jnp.zeros((K, LANE), jnp.float32).at[:, :HIDDEN].set(params["w1"].astype(jnp.float32))
    b1 = jnp.zeros((1, LANE), jnp.float32).at[:, :HIDDEN].set(params["b1"].astype(jnp.float32))
    w2 = jnp.zeros((LANE, LANE), jnp.bfloat16).at[:HIDDEN, :HIDDEN].set(
        params["w2"].astype(jnp.bfloat16))
    b2 = jnp.zeros((1, LANE), jnp.float32).at[:, :HIDDEN].set(params["b2"].astype(jnp.float32))
    w3 = jnp.zeros((LANE, OUT_PAD), jnp.float32).at[:HIDDEN, :OUT_COUNT].set(
        params["w3"].astype(jnp.float32))
    b3 = jnp.zeros((1, OUT_PAD), jnp.float32).at[:, :OUT_COUNT].set(params["b3"].astype(jnp.float32))
    return {"w1": w1, "b1": b1, "w2": w2, "b2": b2, "w3": w3, "b3": b3}


def localnet_reference(x, p):
    y1 = jnp.maximum(x @ p["w1"] + p["b1"], 0.0)
    y2 = jnp.maximum(y1 @ p["w2"] + p["b2"], 0.0)
    return y2 @ p["w3"] + p["b3"]


if __name__ == "__main__":
    # Small grid: 2 rows x 3 cols -> num_lights = 6 -> input_count = 18 + 6 = 24
    n_rows, n_cols = 2, 3
    num_lights = n_rows * n_cols
    input_count = 18 + num_lights     # 24

    key = jax.random.PRNGKey(0)
    k_x, k_x2, k_p = jax.random.split(key, 3)
    params = init_params(k_p, input_count)
    padded = prepare_padded_params(params)

    # Case 1: small batch (single full block, the per-agent RL case).
    batch = 8
    x = jax.random.normal(k_x, (batch, input_count), jnp.float32)
    q = jax.block_until_ready(localnet_forward(x, padded))
    q_ref = localnet_reference(x, params)  # pure f32 reference
    assert q.shape == (batch, OUT_COUNT)
    assert jnp.allclose(q, q_ref, atol=2e-2, rtol=2e-2), (
        f"max abs err {jnp.max(jnp.abs(q - q_ref))}")

    # Case 2: multi-tile grid with a partial last batch block (exercises boundary masking).
    batch2 = 40
    x2 = jax.random.normal(k_x2, (batch2, input_count), jnp.float32)
    q2 = jax.block_until_ready(localnet_forward(x2, padded))
    q2_ref = localnet_reference(x2, params)
    assert q2.shape == (batch2, OUT_COUNT)
    assert jnp.allclose(q2, q2_ref, atol=2e-2, rtol=2e-2), (
        f"max abs err {jnp.max(jnp.abs(q2 - q2_ref))}")

    print("KERNEL_OK")
</pallas_src>

<mosaic_0001>
module attributes {stable_mosaic.version = 11 : i64} {
  func.func @localnet_kernel(%arg0: i32, %arg1: memref<8x24xf32, #tpu.memory_space<vmem>>, %arg2: memref<24x128xf32, #tpu.memory_space<vmem>>, %arg3: memref<1x128xf32, #tpu.memory_space<vmem>>, %arg4: memref<128x128xbf16, #tpu.memory_space<vmem>>, %arg5: memref<1x128xf32, #tpu.memory_space<vmem>>, %arg6: memref<128x8xf32, #tpu.memory_space<vmem>>, %arg7: memref<1x8xf32, #tpu.memory_space<vmem>>, %arg8: memref<8x2xf32, #tpu.memory_space<vmem>>) attributes {dimension_semantics = [#tpu.dimension_semantics<parallel>], iteration_bounds = array<i64: 1>, scalar_prefetch = 0 : i64, scratch_operands = 0 : i64, tpu.core_type = #tpu.core_type<tc>, window_params = [{transform_indices = @transform_0, window_bounds = array<i64: 8, 24>}, {pipeline_mode = #tpu.pipeline_mode<synchronous>, transform_indices = @transform_1, window_bounds = array<i64: 24, 128>}, {pipeline_mode = #tpu.pipeline_mode<synchronous>, transform_indices = @transform_2, window_bounds = array<i64: 1, 128>}, {pipeline_mode = #tpu.pipeline_mode<synchronous>, transform_indices = @transform_3, window_bounds = array<i64: 128, 128>}, {pipeline_mode = #tpu.pipeline_mode<synchronous>, transform_indices = @transform_4, window_bounds = array<i64: 1, 128>}, {pipeline_mode = #tpu.pipeline_mode<synchronous>, transform_indices = @transform_5, window_bounds = array<i64: 128, 8>}, {pipeline_mode = #tpu.pipeline_mode<synchronous>, transform_indices = @transform_6, window_bounds = array<i64: 1, 8>}, {transform_indices = @transform_7, window_bounds = array<i64: 8, 2>}]} {
    %c0 = arith.constant 0 : index
    %c0_0 = arith.constant 0 : index
    %0 = vector.load %arg1[%c0, %c0_0] : memref<8x24xf32, #tpu.memory_space<vmem>>, vector<8x24xf32>
    %c0_1 = arith.constant 0 : index
    %c0_2 = arith.constant 0 : index
    %1 = vector.load %arg2[%c0_1, %c0_2] : memref<24x128xf32, #tpu.memory_space<vmem>>, vector<24x128xf32>
    %cst = arith.constant dense<0.000000e+00> : vector<8x128xf32>
    %2 = tpu.matmul %0, %1, %cst {dimension_numbers = #tpu.dot_dimension_numbers<[1], [0], [0], [1], [0, 0, 1, 1], [], []>} : vector<8x24xf32>, vector<24x128xf32>, vector<8x128xf32> -> vector<8x128xf32>
    %c0_3 = arith.constant 0 : index
    %c0_4 = arith.constant 0 : index
    %3 = vector.load %arg3[%c0_3, %c0_4] : memref<1x128xf32, #tpu.memory_space<vmem>>, vector<1x128xf32>
    %4 = vector.broadcast %3 : vector<1x128xf32> to vector<8x128xf32>
    %5 = arith.addf %2, %4 : vector<8x128xf32>
    %cst_5 = arith.constant 0.000000e+00 : f32
    %6 = vector.broadcast %cst_5 : f32 to vector<8x128xf32>
    %7 = arith.maximumf %5, %6 : vector<8x128xf32>
    %8 = arith.truncf %7 : vector<8x128xf32> to vector<8x128xbf16>
    %c0_6 = arith.constant 0 : index
    %c0_7 = arith.constant 0 : index
    %9 = vector.load %arg4[%c0_6, %c0_7] : memref<128x128xbf16, #tpu.memory_space<vmem>>, vector<128x128xbf16>
    %cst_8 = arith.constant dense<0.000000e+00> : vector<8x128xf32>
    %10 = tpu.matmul %8, %9, %cst_8 {dimension_numbers = #tpu.dot_dimension_numbers<[1], [0], [0], [1], [0, 0, 1, 1], [], []>} : vector<8x128xbf16>, vector<128x128xbf16>, vector<8x128xf32> -> vector<8x128xf32>
    %c0_9 = arith.constant 0 : index
    %c0_10 = arith.constant 0 : index
    %11 = vector.load %arg5[%c0_9, %c0_10] : memref<1x128xf32, #tpu.memory_space<vmem>>, vector<1x128xf32>
    %12 = vector.broadcast %11 : vector<1x128xf32> to vector<8x128xf32>
    %13 = arith.addf %10, %12 : vector<8x128xf32>
    %cst_11 = arith.constant 0.000000e+00 : f32
    %14 = vector.broadcast %cst_11 : f32 to vector<8x128xf32>
    %15 = arith.maximumf %13, %14 : vector<8x128xf32>
    %c0_12 = arith.constant 0 : index
    %c0_13 = arith.constant 0 : index
    %16 = vector.load %arg6[%c0_12, %c0_13] : memref<128x8xf32, #tpu.memory_space<vmem>>, vector<128x8xf32>
    %cst_14 = arith.constant dense<0.000000e+00> : vector<8x8xf32>
    %17 = tpu.matmul %15, %16, %cst_14 {dimension_numbers = #tpu.dot_dimension_numbers<[1], [0], [0], [1], [0, 0, 1, 1], [], []>} : vector<8x128xf32>, vector<128x8xf32>, vector<8x8xf32> -> vector<8x8xf32>
    %c0_15 = arith.constant 0 : index
    %c0_16 = arith.constant 0 : index
    %18 = vector.load %arg7[%c0_15, %c0_16] : memref<1x8xf32, #tpu.memory_space<vmem>>, vector<1x8xf32>
    %19 = vector.broadcast %18 : vector<1x8xf32> to vector<8x8xf32>
    %20 = arith.addf %17, %19 : vector<8x8xf32>
    %21 = vector.extract_strided_slice %20 {offsets = [0, 0], sizes = [8, 2], strides = [1, 1]} : vector<8x8xf32> to vector<8x2xf32>
    %c0_17 = arith.constant 0 : index
    %c0_18 = arith.constant 0 : index
    %22 = vector.load %arg8[%c0_17, %c0_18] : memref<8x2xf32, #tpu.memory_space<vmem>>, vector<8x2xf32>
    tpu.vector_store %arg8[%c0_17, %c0_18], %21 {strides = array<i32>} : memref<8x2xf32, #tpu.memory_space<vmem>>, vector<8x2xf32>,
    return
  }
  func.func @transform_0(%arg0: i32) -> (i32, i32) {
    %c0_i32 = arith.constant 0 : i32
    %c0_i32_0 = arith.constant 0 : i32
    return %arg0, %c0_i32 : i32, i32
  }
  func.func @transform_1(%arg0: i32) -> (i32, i32) {
    %c0_i32 = arith.constant 0 : i32
    %c0_i32_0 = arith.constant 0 : i32
    %c0_i32_1 = arith.constant 0 : i32
    return %c0_i32, %c0_i32_0 : i32, i32
  }
  func.func @transform_2(%arg0: i32) -> (i32, i32) {
    %c0_i32 = arith.constant 0 : i32
    %c0_i32_0 = arith.constant 0 : i32
    %c0_i32_1 = arith.constant 0 : i32
    return %c0_i32, %c0_i32_0 : i32, i32
  }
  func.func @transform_3(%arg0: i32) -> (i32, i32) {
    %c0_i32 = arith.constant 0 : i32
    %c0_i32_0 = arith.constant 0 : i32
    %c0_i32_1 = arith.constant 0 : i32
    return %c0_i32, %c0_i32_0 : i32, i32
  }
  func.func @transform_4(%arg0: i32) -> (i32, i32) {
    %c0_i32 = arith.constant 0 : i32
    %c0_i32_0 = arith.constant 0 : i32
    %c0_i32_1 = arith.constant 0 : i32
    return %c0_i32, %c0_i32_0 : i32, i32
  }
  func.func @transform_5(%arg0: i32) -> (i32, i32) {
    %c0_i32 = arith.constant 0 : i32
    %c0_i32_0 = arith.constant 0 : i32
    %c0_i32_1 = arith.constant 0 : i32
    return %c0_i32, %c0_i32_0 : i32, i32
  }
  func.func @transform_6(%arg0: i32) -> (i32, i32) {
    %c0_i32 = arith.constant 0 : i32
    %c0_i32_0 = arith.constant 0 : i32
    %c0_i32_1 = arith.constant 0 : i32
    return %c0_i32, %c0_i32_0 : i32, i32
  }
  func.func @transform_7(%arg0: i32) -> (i32, i32) {
    %c0_i32 = arith.constant 0 : i32
    %c0_i32_0 = arith.constant 0 : i32
    return %arg0, %c0_i32 : i32, i32
  }
}

</mosaic_0001>

<bundles_post_ra>
// kernel: localnet_forward.1
= control target key start
LH: loop header
LB: loop body
LE: loop exit
PB: predicated region body
PF: predicated region fallthrough
CT: control target
= control target key end

     0   :  { %vm34_vm0 = vcmask 195584   ;;  %vm182_vm1 = vcmask 15360   ;;  %s368_s1 = inlined_call_operand.vmem [shape: f32[24,128], index: 1, kind: input, shape index: {}]   ;;  %s369_s3 = inlined_call_operand.vmem [shape: bf16[128,128], index: 3, kind: input, shape index: {}]   ;;  %s370_s0 = inlined_call_operand.vmem [shape: f32[8,24], index: 0, kind: input, shape index: {}]   ;;  %s371_s2 = inlined_call_operand.vmem [shape: f32[1,128], index: 2, kind: input, shape index: {}]   ;;  %s372_s4 = inlined_call_operand.vmem [shape: f32[1,128], index: 4, kind: input, shape index: {}]   ;;  %s373_s5 = inlined_call_operand.vmem [shape: f32[128,8], index: 5, kind: input, shape index: {}]   ;;  %s374_s6 = inlined_call_operand.vmem [shape: f32[1,8], index: 6, kind: input, shape index: {}]   ;;  %s375_s7 = inlined_call_operand.vmem [shape: f32[8,2], index: 7, kind: output, shape index: {}]  }
   0x1   :  { %v29_v0 = vld [vmem:[%s368_s1 + $0x10] sm:$0xff]  ;;  %v28_v1 = vld [vmem:[%s368_s1 + $0x8] sm:$0xff]  ;;  %v228_v2 = vld [vmem:[%s369_s3 + $0x38] sm:$0xff] }
   0x2   :  { %51 = vmatpush.msra.mxu0 %v29_v0  ;;  %v27_v3 = vld [vmem:[%s368_s1] sm:$0xff]  ;;  %128 = vmatpush.bf16.msra.mxu1 %v228_v2  ;;  %v227_v5 = vld [vmem:[%s369_s3 + $0x30] sm:$0xff]  ;;  %v226_v6 = vld [vmem:[%s369_s3 + $0x28] sm:$0xff] }
   0x3   :  { %v26_v4 = vld [vmem:[%s370_s0] sm:$0xff]  ;;  %v224_v8 = vld [vmem:[%s369_s3 + $0x18] sm:$0xff]  ;;  %v223_v9 = vld [vmem:[%s369_s3 + $0x10] sm:$0xff] }
   0x4   :  { %52 = vmatpush.msra.mxu0 %v28_v1  ;;  %v225_v7 = vld [vmem:[%s369_s3 + $0x20] sm:$0xff]  ;;  %v222_v10 = vld [vmem:[%s369_s3 + $0x8] sm:$0xff]  ;;  %v157_v12 = vld [vmem:[%s373_s5 + $0x78] sm:$0xff] }
   0x5   :  { %v221_v11 = vld [vmem:[%s369_s3] sm:$0xff]  ;;  %v156_v13 = vld [vmem:[%s373_s5 + $0x70] sm:$0xff]  ;;  %162 = vmatpush.msra.mxu2 %v157_v12  ;;  %v155_v14 = vld [vmem:[%s373_s5 + $0x68] sm:$0xff] }
   0x6   :  { %53 = vmatpush.msra.mxu0 %v27_v3  ;;  %129 = vmatpush.bf16.msra.mxu1 %v227_v5  ;;  %v154_v15 = vld [vmem:[%s373_s5 + $0x60] sm:$0xff]  ;;  %v153_v16 = vld [vmem:[%s373_s5 + $0x58] sm:$0xff]  ;;  %v152_v17 = vld [vmem:[%s373_s5 + $0x50] sm:$0xff] }
   0x7   :  { %188 = vmatmul.msk.f32.vlgmr.msra.gmra.mxu0 %vm34_vm0, %v26_v4  ;;  %163 = vmatpush.msra.mxu2 %v156_v13  ;;  %v151_v18 = vld [vmem:[%s373_s5 + $0x48] sm:$0xff]  ;;  %v150_v19 = vld [vmem:[%s373_s5 + $0x40] sm:$0xff]  ;;  %v149_v20 = vld [vmem:[%s373_s5 + $0x38] sm:$0xff] }
   0x8   :  { %v148_v21 = vld [vmem:[%s373_s5 + $0x30] sm:$0xff]  ;;  %v147_v22 = vld [vmem:[%s373_s5 + $0x28] sm:$0xff]  ;;  %v146_v23 = vld [vmem:[%s373_s5 + $0x20] sm:$0xff] }
   0x9   :  { %164 = vmatpush.msra.mxu2 %v155_v14  ;;  %v229_v24 = vld [vmem:[%s371_s2] ss:$0 sm:$0xff]  ;;  %v145_v25 = vld [vmem:[%s373_s5 + $0x18] sm:$0xff]  ;;  %v144_v30 = vld [vmem:[%s373_s5 + $0x10] sm:$0xff] }
   0xa   :  { %130 = vmatpush.bf16.msra.mxu1 %v226_v6  ;;  %v143_v31 = vld [vmem:[%s373_s5 + $0x8] sm:$0xff]  ;;  %v142_v32 = vld [vmem:[%s373_s5] sm:$0xff] }
   0xb   :  { %165 = vmatpush.msra.mxu2 %v154_v15  ;;  %v230_v33 = vld [vmem:[%s372_s4] ss:$0 sm:$0xff] }
   0xc   :  { %v231_v38 = vld [vmem:[%s374_s6] ss:$0 sm:$0xff] }
   0xd   :  { %166 = vmatpush.msra.mxu2 %v153_v16 }
   0xe   :  { %131 = vmatpush.bf16.msra.mxu1 %v225_v7 }
   0xf   :  { %167 = vmatpush.msra.mxu2 %v152_v17 }
  0x11   :  { %168 = vmatpush.msra.mxu2 %v151_v18 }
  0x12   :  { %132 = vmatpush.bf16.msra.mxu1 %v224_v8 }
  0x13   :  { %169 = vmatpush.msra.mxu2 %v150_v19 }
  0x15   :  { %170 = vmatpush.msra.mxu2 %v149_v20 }
  0x16   :  { %133 = vmatpush.bf16.msra.mxu1 %v223_v9 }
  0x17   :  { %171 = vmatpush.msra.mxu2 %v148_v21 }
  0x19   :  { %172 = vmatpush.msra.mxu2 %v147_v22 }
  0x1a   :  { %134 = vmatpush.bf16.msra.mxu1 %v222_v10 }
  0x1b   :  { %173 = vmatpush.msra.mxu2 %v146_v23 }
  0x1d   :  { %174 = vmatpush.msra.mxu2 %v145_v25 }
  0x1e   :  { %135 = vmatpush.bf16.msra.mxu1 %v221_v11 }
  0x1f   :  { %175 = vmatpush.msra.mxu2 %v144_v30 }
  0x21   :  { %176 = vmatpush.msra.mxu2 %v143_v31 }
  0x23   :  { %177 = vmatpush.msra.mxu2 %v142_v32 }
  0x84   :  { %v55_v26 = vpop.f32.mrf.mxu0 }
  0x85   :  { %v56_v27 = vadd.f32 %v229_v24, %v55_v26 }
  0x87   :  { %v58_v28 = vmax.f32 %v56_v27, 0.0 }
  0x89   :  { %v59_v29 = vpack.c.bf16 %v58_v28, %v58_v28 }
  0x8b   :  { %136 = vmatmul.bf16.vlgmr.msra.gmra.mxu1 %v59_v29 }
 0x108   :  { %v137_v34 = vpop.f32.mrf.mxu1 }
 0x109   :  { %v138_v35 = vadd.f32 %v230_v33, %v137_v34 }
 0x10b   :  { %v141_v36 = vmax.f32 %v138_v35, 0.0 }
 0x10d   :  { %178 = vmatmul.f32.vlgmr.msra.gmra.mxu2 %v141_v36 }
 0x110   :  { %v139_v37 = vpop.f32.mrf.mxu1 }
 0x190   :  { %v179_v39 = vpop.f32.mrf.mxu2 }
 0x191   :  { %v180_v40 = vadd.f32 %v231_v38, %v179_v39 }
 0x193   :  { %183 = vst.msk [vmem:[%s375_s7] sm:$0xff] %vm182_vm1, %v180_v40 }

</bundles_post_ra>
